<compile_context>
chip_gen: v5e
topology: v5e:2x2
jax: 0.10.0
libtpu: 0.0.40
codegen_flags: <defaults>
</compile_context>

<pallas_src>
import functools

import jax
import jax.numpy as jnp
from jax.experimental import pallas as pl
from jax.experimental.pallas import tpu as pltpu

# --- packed-slab layout (all rows 128 lanes wide, f32) -----------------------
# rows   0:128 -> fc2 weight (64, 32) zero-padded to (128, 128)
# rows 128:256 -> fc3 weight (32,  4) zero-padded to (128, 128)
# row  256     -> fc1 weight row (1, 64) zero-padded to 128
# row  257     -> fc1 bias  (64,) zero-padded to 128
# row  258     -> fc2 bias  (32,) zero-padded to 128
# row  259     -> fc3 bias  ( 4,) zero-padded to 128
# rows 260:264 -> padding (sublane alignment)
_SLAB_ROWS = 264
_LANES = 128
_W2_ROW, _W3_ROW, _V_ROW = 0, 128, 256


def dqn_kernel(x_ref, p_ref, o_ref):
    x = x_ref[...]                                    # (TB, 1)

    # One aligned (8, 128) load for all vector params, sliced in registers.
    vrows = p_ref[_V_ROW:_V_ROW + 8, :]               # (8, 128)
    w1 = vrows[0:1, :]                                 # (1, 128) fc1 weight row
    b1 = vrows[1:2, :]                                 # (1, 128) fc1 bias
    b2 = vrows[2:3, :]                                 # (1, 128) fc2 bias
    b3 = vrows[3:4, :]                                 # (1, 128) fc3 bias

    # fc1 (K == 1): degenerate outer product -> VPU broadcast multiply, no MXU.
    h1 = jnp.maximum(x * w1 + b1, 0.0)                 # (TB, 128); cols 64: stay 0

    # fc2 + relu on the MXU (zero-padded 128x128 weight keeps lanes dense).
    h2 = jnp.dot(h1, p_ref[_W2_ROW:_W2_ROW + 128, :],
                 preferred_element_type=jnp.float32)
    h2 = jnp.maximum(h2 + b2, 0.0)                     # cols 32: stay 0

    # fc3 (no activation).
    out = jnp.dot(h2, p_ref[_W3_ROW:_W3_ROW + 128, :],
                  preferred_element_type=jnp.float32)
    o_ref[...] = (out + b3).astype(o_ref.dtype)        # lane-dense (TB, 128) store


def pack_params(params):
    """Pack w1,b1,w2,b2,w3,b3 into one zero-padded (264, 128) f32 slab (do once)."""
    w1, b1 = params["w1"], params["b1"]                # (1, 64), (1, 64)
    w2, b2 = params["w2"], params["b2"]                # (64, 32), (1, 32)
    w3, b3 = params["w3"], params["b3"]                # (32, 4), (1, 4)
    slab = jnp.zeros((_SLAB_ROWS, _LANES), jnp.float32)
    slab = slab.at[_W2_ROW:_W2_ROW + w2.shape[0], :w2.shape[1]].set(w2)
    slab = slab.at[_W3_ROW:_W3_ROW + w3.shape[0], :w3.shape[1]].set(w3)
    slab = slab.at[_V_ROW + 0, :w1.shape[1]].set(w1[0])
    slab = slab.at[_V_ROW + 1, :b1.shape[1]].set(b1[0])
    slab = slab.at[_V_ROW + 2, :b2.shape[1]].set(b2[0])
    slab = slab.at[_V_ROW + 3, :b3.shape[1]].set(b3[0])
    return slab


@functools.partial(jax.jit, static_argnames=("block_b",))
def dqn_forward(x, slab, *, block_b=512):
    """x: (B, 1) f32 states; slab: pack_params(...) output. Returns (B, 4) Q-values."""
    B = x.shape[0]
    # Block either equals the full batch dim (small B) or is a /8-aligned tile.
    tb = B if B <= block_b else block_b
    grid = (pl.cdiv(B, tb),)

    out_padded = pl.pallas_call(
        dqn_kernel,
        out_shape=jax.ShapeDtypeStruct((B, _LANES), jnp.float32),
        grid=grid,
        in_specs=[
            pl.BlockSpec((tb, 1), lambda i: (i, 0)),                 # streamed batch
            pl.BlockSpec((_SLAB_ROWS, _LANES), lambda i: (0, 0)),    # resident weights
        ],
        out_specs=pl.BlockSpec((tb, _LANES), lambda i: (i, 0)),
        compiler_params=pltpu.CompilerParams(
            dimension_semantics=("parallel",)),        # batch axis across TCs (v7x)
    )(x, slab)
    return out_padded[:, :4]


def init_params(key):
    """Deterministic init mimicking torch.nn.Linear: U(-1/sqrt(fan_in), +1/sqrt(fan_in))."""
    def linear(key, fan_in, fan_out):
        kw, kb = jax.random.split(key)
        bound = 1.0 / (fan_in ** 0.5)
        w = jax.random.uniform(kw, (fan_in, fan_out), jnp.float32, -bound, bound)
        b = jax.random.uniform(kb, (1, fan_out), jnp.float32, -bound, bound)
        return w, b

    k1, k2, k3 = jax.random.split(key, 3)
    w1, b1 = linear(k1, 1, 64)
    w2, b2 = linear(k2, 64, 32)
    w3, b3 = linear(k3, 32, 4)
    return {"w1": w1, "b1": b1, "w2": w2, "b2": b2, "w3": w3, "b3": b3}


def reference_forward(x, p):
    h1 = jnp.maximum(x @ p["w1"] + p["b1"], 0.0)
    h2 = jnp.maximum(h1 @ p["w2"] + p["b2"], 0.0)
    return h2 @ p["w3"] + p["b3"]


if __name__ == "__main__":
    key = jax.random.PRNGKey(0)
    kp, kx1, kx2 = jax.random.split(key, 3)
    params = init_params(kp)
    slab = pack_params(params)   # pack once, reuse across calls

    # Small batch (single grid step), as implied by DQN.forward's 1-feature state.
    x_small = jax.random.normal(kx1, (8, 1), jnp.float32)
    out = jax.block_until_ready(dqn_forward(x_small, slab))
    ref = reference_forward(x_small, params)
    assert out.shape == (8, 4), out.shape
    assert jnp.allclose(out, ref, atol=2e-4, rtol=1e-4), "mismatch vs JAX reference (B=8)"

    # Replay-buffer-sized batch exercising the batch grid + parallel axis.
    x_big = jax.random.normal(kx2, (1024, 1), jnp.float32)
    out_big = jax.block_until_ready(dqn_forward(x_big, slab))
    ref_big = reference_forward(x_big, params)
    assert out_big.shape == (1024, 4), out_big.shape
    assert jnp.allclose(out_big, ref_big, atol=2e-4, rtol=1e-4), "mismatch vs JAX reference (B=1024)"

    print("KERNEL_OK")
</pallas_src>

<mosaic_0001>
module attributes {stable_mosaic.version = 11 : i64} {
  func.func @dqn_kernel(%arg0: i32, %arg1: memref<8x1xf32, #tpu.memory_space<vmem>>, %arg2: memref<264x128xf32, #tpu.memory_space<vmem>>, %arg3: memref<8x128xf32, #tpu.memory_space<vmem>>) attributes {dimension_semantics = [#tpu.dimension_semantics<parallel>], iteration_bounds = array<i64: 1>, scalar_prefetch = 0 : i64, scratch_operands = 0 : i64, tpu.core_type = #tpu.core_type<tc>, window_params = [{transform_indices = @transform_0, window_bounds = array<i64: 8, 1>}, {pipeline_mode = #tpu.pipeline_mode<synchronous>, transform_indices = @transform_1, window_bounds = array<i64: 264, 128>}, {transform_indices = @transform_2, window_bounds = array<i64: 8, 128>}]} {
    %c0 = arith.constant 0 : index
    %c0_0 = arith.constant 0 : index
    %0 = vector.load %arg1[%c0, %c0_0] : memref<8x1xf32, #tpu.memory_space<vmem>>, vector<8x1xf32>
    %c256 = arith.constant 256 : index
    %c0_1 = arith.constant 0 : index
    %1 = vector.load %arg2[%c256, %c0_1] : memref<264x128xf32, #tpu.memory_space<vmem>>, vector<8x128xf32>
    %2 = vector.extract_strided_slice %1 {offsets = [0, 0], sizes = [1, 128], strides = [1, 1]} : vector<8x128xf32> to vector<1x128xf32>
    %3 = vector.extract_strided_slice %1 {offsets = [1, 0], sizes = [1, 128], strides = [1, 1]} : vector<8x128xf32> to vector<1x128xf32>
    %4 = vector.extract_strided_slice %1 {offsets = [2, 0], sizes = [1, 128], strides = [1, 1]} : vector<8x128xf32> to vector<1x128xf32>
    %5 = vector.extract_strided_slice %1 {offsets = [3, 0], sizes = [1, 128], strides = [1, 1]} : vector<8x128xf32> to vector<1x128xf32>
    %6 = vector.broadcast %0 : vector<8x1xf32> to vector<8x128xf32>
    %7 = vector.broadcast %2 : vector<1x128xf32> to vector<8x128xf32>
    %8 = arith.mulf %6, %7 : vector<8x128xf32>
    %9 = vector.broadcast %3 : vector<1x128xf32> to vector<8x128xf32>
    %10 = arith.addf %8, %9 : vector<8x128xf32>
    %cst = arith.constant 0.000000e+00 : f32
    %11 = vector.broadcast %cst : f32 to vector<8x128xf32>
    %12 = arith.maximumf %10, %11 : vector<8x128xf32>
    %c0_2 = arith.constant 0 : index
    %c0_3 = arith.constant 0 : index
    %13 = vector.load %arg2[%c0_2, %c0_3] : memref<264x128xf32, #tpu.memory_space<vmem>>, vector<128x128xf32>
    %cst_4 = arith.constant dense<0.000000e+00> : vector<8x128xf32>
    %14 = tpu.matmul %12, %13, %cst_4 {dimension_numbers = #tpu.dot_dimension_numbers<[1], [0], [0], [1], [0, 0, 1, 1], [], []>} : vector<8x128xf32>, vector<128x128xf32>, vector<8x128xf32> -> vector<8x128xf32>
    %15 = vector.broadcast %4 : vector<1x128xf32> to vector<8x128xf32>
    %16 = arith.addf %14, %15 : vector<8x128xf32>
    %cst_5 = arith.constant 0.000000e+00 : f32
    %17 = vector.broadcast %cst_5 : f32 to vector<8x128xf32>
    %18 = arith.maximumf %16, %17 : vector<8x128xf32>
    %c128 = arith.constant 128 : index
    %c0_6 = arith.constant 0 : index
    %19 = vector.load %arg2[%c128, %c0_6] : memref<264x128xf32, #tpu.memory_space<vmem>>, vector<128x128xf32>
    %cst_7 = arith.constant dense<0.000000e+00> : vector<8x128xf32>
    %20 = tpu.matmul %18, %19, %cst_7 {dimension_numbers = #tpu.dot_dimension_numbers<[1], [0], [0], [1], [0, 0, 1, 1], [], []>} : vector<8x128xf32>, vector<128x128xf32>, vector<8x128xf32> -> vector<8x128xf32>
    %21 = vector.broadcast %5 : vector<1x128xf32> to vector<8x128xf32>
    %22 = arith.addf %20, %21 : vector<8x128xf32>
    %c0_8 = arith.constant 0 : index
    %c0_9 = arith.constant 0 : index
    %23 = vector.load %arg3[%c0_8, %c0_9] : memref<8x128xf32, #tpu.memory_space<vmem>>, vector<8x128xf32>
    tpu.vector_store %arg3[%c0_8, %c0_9], %22 {strides = array<i32>} : memref<8x128xf32, #tpu.memory_space<vmem>>, vector<8x128xf32>,
    return
  }
  func.func @transform_0(%arg0: i32) -> (i32, i32) {
    %c0_i32 = arith.constant 0 : i32
    %c0_i32_0 = arith.constant 0 : i32
    return %arg0, %c0_i32 : i32, i32
  }
  func.func @transform_1(%arg0: i32) -> (i32, i32) {
    %c0_i32 = arith.constant 0 : i32
    %c0_i32_0 = arith.constant 0 : i32
    %c0_i32_1 = arith.constant 0 : i32
    return %c0_i32, %c0_i32_0 : i32, i32
  }
  func.func @transform_2(%arg0: i32) -> (i32, i32) {
    %c0_i32 = arith.constant 0 : i32
    %c0_i32_0 = arith.constant 0 : i32
    return %arg0, %c0_i32 : i32, i32
  }
}

</mosaic_0001>

<bundles_post_ra>
// kernel: dqn_forward.1
= control target key start
LH: loop header
LB: loop body
LE: loop exit
PB: predicated region body
PF: predicated region fallthrough
CT: control target
= control target key end

     0   :  { %7 = vsyncpa [#allocation3], 0  ;;  %s151_s12 = smov [#allocation2]   ;;  %s152_s14 = smov 128   ;;  %s179_s0 = inlined_call_operand.vmem [shape: f32[8,1], index: 0, kind: input, shape index: {}]   ;;  %s180_s1 = inlined_call_operand.hbm [shape: f32[264,128], index: 1, kind: input, shape index: {}]   ;;  %s181_s2 = inlined_call_operand.vmem [shape: f32[8,128], index: 2, kind: output, shape index: {}]  }
   0x1   :  { %s14_s11 = sshll.u32 %s180_s1, 4  ;;  %s16_s13 = sshll.u32 %s151_s12, 4  ;;  %s15_s11 = int_to_ptr.hbm [resolvable:$true] %s14_s11  ;;  %s17_s13 = int_to_ptr.vmem [resolvable:$true] %s16_s13 }
   0x2   :  { %s153_s15 = smov 8  }
   0x3   :  { %22 = dma.hbm_to_vmem [thread:$0]  %s15_s11, 4224, %s17_s13, [#allocation3], %s152_s14, %s152_s14, %s153_s15  }
   0x4   :  { %149 = dma.done.wait [#allocation3], 4224  }
   0x5   :  { %150 = vsyncadd [#allocation3], 4294963072  ;;  %v154_v0 = vmov 0   ;;  %v27_v1 = vld [vmem:[%s179_s0] sm:$0xff]  ;;  %v54_v2 = vld [vmem:[#allocation2 + $0x78] sm:$0xff] }
   0x6   :  { %124 = vset.pattern.permute.xlu0 %v154_v0  ;;  %v53_v3 = vld [vmem:[#allocation2 + $0x70] sm:$0xff]  ;;  %56 = vmatpush.msra.mxu0 %v54_v2  ;;  %v52_v4 = vld [vmem:[#allocation2 + $0x68] sm:$0xff]  ;;  %v51_v5 = vld [vmem:[#allocation2 + $0x60] sm:$0xff] }
   0x7   :  { %31 = vperm.xlu0 %124, %v27_v1   ;;  %v50_v6 = vld [vmem:[#allocation2 + $0x58] sm:$0xff]  ;;  %v49_v7 = vld [vmem:[#allocation2 + $0x50] sm:$0xff]  ;;  %v48_v8 = vld [vmem:[#allocation2 + $0x48] sm:$0xff] }
   0x8   :  { %57 = vmatpush.msra.mxu0 %v53_v3  ;;  %v47_v9 = vld [vmem:[#allocation2 + $0x40] sm:$0xff]  ;;  %v46_v10 = vld [vmem:[#allocation2 + $0x38] sm:$0xff]  ;;  %v45_v11 = vld [vmem:[#allocation2 + $0x30] sm:$0xff] }
   0x9   :  { %v44_v12 = vld [vmem:[#allocation2 + $0x28] sm:$0xff]  ;;  %v43_v13 = vld [vmem:[#allocation2 + $0x20] sm:$0xff]  ;;  %v42_v14 = vld [vmem:[#allocation2 + $0x18] sm:$0xff] }
   0xa   :  { %58 = vmatpush.msra.mxu0 %v52_v4  ;;  %v41_v15 = vld [vmem:[#allocation2 + $0x10] sm:$0xff]  ;;  %v40_v16 = vld [vmem:[#allocation2 + $0x8] sm:$0xff]  ;;  %v39_v17 = vld [vmem:[#allocation2] sm:$0xff] }
   0xb   :  { %v92_v18 = vld [vmem:[#allocation2 + $0xf8] sm:$0xff]  ;;  %v91_v19 = vld [vmem:[#allocation2 + $0xf0] sm:$0xff]  ;;  %v90_v20 = vld [vmem:[#allocation2 + $0xe8] sm:$0xff] }
   0xc   :  { %59 = vmatpush.msra.mxu0 %v51_v5  ;;  %94 = vmatpush.msra.mxu1 %v92_v18  ;;  %v89_v21 = vld [vmem:[#allocation2 + $0xe0] sm:$0xff]  ;;  %v88_v22 = vld [vmem:[#allocation2 + $0xd8] sm:$0xff]  ;;  %v87_v23 = vld [vmem:[#allocation2 + $0xd0] sm:$0xff] }
   0xd   :  { %v86_v24 = vld [vmem:[#allocation2 + $0xc8] sm:$0xff]  ;;  %v85_v25 = vld [vmem:[#allocation2 + $0xc0] sm:$0xff]  ;;  %v84_v26 = vld [vmem:[#allocation2 + $0xb8] sm:$0xff] }
   0xe   :  { %60 = vmatpush.msra.mxu0 %v50_v6  ;;  %95 = vmatpush.msra.mxu1 %v91_v19  ;;  %v83_v27 = vld [vmem:[#allocation2 + $0xb0] sm:$0xff]  ;;  %v82_v28 = vld [vmem:[#allocation2 + $0xa8] sm:$0xff]  ;;  %v28_v29 = vld [vmem:[#allocation2 + $0x100] sm:$0xff] }
   0xf   :  { %v81_v30 = vld [vmem:[#allocation2 + $0xa0] sm:$0xff]  ;;  %v34_v31 = vperm.slane %v28_v29, 0  ;;  %v80_v32 = vld [vmem:[#allocation2 + $0x98] sm:$0xff]  ;;  %v36_v33 = vperm.slane %v28_v29, 1  ;;  %v79_v38 = vld [vmem:[#allocation2 + $0x90] sm:$0xff]  ;;  %v55_v41 = vperm.slane %v28_v29, 2 }
  0x10   :  { %61 = vmatpush.msra.mxu0 %v49_v7  ;;  %96 = vmatpush.msra.mxu1 %v90_v20  ;;  %v78_v39 = vld [vmem:[#allocation2 + $0x88] sm:$0xff]  ;;  %v77_v40 = vld [vmem:[#allocation2 + $0x80] sm:$0xff]  ;;  %v93_v45 = vperm.slane %v28_v29, 3 }
  0x12   :  { %62 = vmatpush.msra.mxu0 %v48_v8  ;;  %97 = vmatpush.msra.mxu1 %v89_v21 }
  0x14   :  { %63 = vmatpush.msra.mxu0 %v47_v9  ;;  %98 = vmatpush.msra.mxu1 %v88_v22 }
  0x16   :  { %64 = vmatpush.msra.mxu0 %v46_v10  ;;  %99 = vmatpush.msra.mxu1 %v87_v23 }
  0x18   :  { %65 = vmatpush.msra.mxu0 %v45_v11  ;;  %100 = vmatpush.msra.mxu1 %v86_v24 }
  0x1a   :  { %66 = vmatpush.msra.mxu0 %v44_v12  ;;  %101 = vmatpush.msra.mxu1 %v85_v25 }
  0x1c   :  { %67 = vmatpush.msra.mxu0 %v43_v13  ;;  %102 = vmatpush.msra.mxu1 %v84_v26 }
  0x1e   :  { %68 = vmatpush.msra.mxu0 %v42_v14  ;;  %103 = vmatpush.msra.mxu1 %v83_v27 }
  0x20   :  { %69 = vmatpush.msra.mxu0 %v41_v15  ;;  %104 = vmatpush.msra.mxu1 %v82_v28 }
  0x22   :  { %70 = vmatpush.msra.mxu0 %v40_v16  ;;  %105 = vmatpush.msra.mxu1 %v81_v30 }
  0x24   :  { %71 = vmatpush.msra.mxu0 %v39_v17  ;;  %106 = vmatpush.msra.mxu1 %v80_v32 }
  0x26   :  { %107 = vmatpush.msra.mxu1 %v79_v38 }
  0x28   :  { %108 = vmatpush.msra.mxu1 %v78_v39 }
  0x2a   :  { %109 = vmatpush.msra.mxu1 %v77_v40 }
  0x79   :  { %v32_v34 = vpop.permute.xlu0 %31 }
  0x7a   :  { %v35_v35 = vmul.f32 %v34_v31, %v32_v34 }
  0x7c   :  { %v37_v36 = vadd.f32 %v36_v33, %v35_v35 }
  0x7e   :  { %v38_v37 = vmax.f32 %v37_v36, 0.0 }
  0x80   :  { %72 = vmatmul.f32.vlgmr.msra.gmra.mxu0 %v38_v37 }
  0xfd   :  { %v73_v42 = vpop.f32.mrf.mxu0 }
  0xfe   :  { %v74_v43 = vadd.f32 %v73_v42, %v55_v41 }
 0x100   :  { %v76_v44 = vmax.f32 %v74_v43, 0.0 }
 0x102   :  { %110 = vmatmul.f32.vlgmr.msra.gmra.mxu1 %v76_v44 }
 0x17f   :  { %v111_v46 = vpop.f32.mrf.mxu1 }
 0x180   :  { %v112_v47 = vadd.f32 %v111_v46, %v93_v45 }
 0x182   :  { %114 = vst [vmem:[%s181_s2] sm:$0xff] %v112_v47 }
 0x183   :  { %119 = vsyncpa [#allocation3], 1 }

</bundles_post_ra>
